<compile_context>
chip_gen: v5e
topology: v5e:2x2
jax: 0.10.0
libtpu: 0.0.40
codegen_flags: <defaults>
</compile_context>

<pallas_src>
import functools

import jax
import jax.numpy as jnp
from jax import lax
from jax.experimental import pallas as pl
from jax.experimental.pallas import tpu as pltpu


def _round_up(x: int, m: int) -> int:
    return ((x + m - 1) // m) * m


def _codebook_kernel(z_ref, wdt_ref, wut_ref, emb_ref, embt_ref, esq_ref,
                     zq_ref, zed_ref, code_ref, rse_ref):
    # One grid step = one tile of rows (flattened (B, T)).
    z = z_ref[...]          # [TR, Din]
    wdt = wdt_ref[...]      # [Din, De]   (proj_down weight, pre-transposed)
    wut = wut_ref[...]      # [De, Din]   (proj_up weight, pre-transposed)
    emb = emb_ref[...]      # [Np, De]    (codebook, N padded to multiple of 128)
    embt = embt_ref[...]    # [De, Np]    (codebook, pre-transposed)
    e_sq = esq_ref[...]     # [1, Np]     (precomputed ||E_n||^2; +inf on padding)

    n_total = embt.shape[-1]

    # proj_down: [TR, De]
    z_down = jnp.dot(z, wdt, preferred_element_type=jnp.float32)

    # Distance up to a per-row constant: ||E_n||^2 - 2 z.E_n   (z_sq dropped:
    # it does not change the argmin).
    cross = jnp.dot(z_down, embt, preferred_element_type=jnp.float32)   # [TR, Np]
    dist = e_sq - 2.0 * cross                                           # [TR, Np]

    # argmin with first-index tie-break (matches torch.min(...).indices).
    dmin = jnp.min(dist, axis=-1, keepdims=True)                        # [TR, 1]
    lane_idx = lax.broadcasted_iota(jnp.int32, dist.shape, 1)           # [TR, Np]
    masked_idx = jnp.where(dist <= dmin, lane_idx, jnp.int32(n_total))
    code = jnp.min(masked_idx, axis=-1, keepdims=True)                  # [TR, 1]

    # Dequantize: exact one-hot gather via MXU matmul.
    onehot = (lane_idx == code).astype(jnp.float32)                     # [TR, Np]
    z_q_down = jnp.dot(onehot, emb, preferred_element_type=jnp.float32)  # [TR, De]

    # Per-row squared-error partial sum; the per-batch mean is finished outside.
    diff = z_q_down - z_down
    rse = jnp.sum(diff * diff, axis=-1, keepdims=True)                  # [TR, 1]

    # proj_up: [TR, Din]
    z_q = jnp.dot(z_q_down, wut, preferred_element_type=jnp.float32)

    zq_ref[...] = z_q.astype(zq_ref.dtype)
    zed_ref[...] = z_down.astype(zed_ref.dtype)
    code_ref[...] = code
    rse_ref[...] = rse


@functools.partial(jax.jit, static_argnames=("row_tile",))
def codebook_forward(z_e, wd, wu, emb, *, row_tile=256):
    """Codebook.forward (inference). wd:[De,Din], wu:[Din,De], emb:[N,De]."""
    B, T, Din = z_e.shape
    De = wd.shape[0]
    N = emb.shape[0]
    R = B * T

    # Flatten rows and pad to a multiple of the row tile (padding rows are
    # computed on zeros and sliced off afterwards).
    tr = min(row_tile, _round_up(R, 8))
    Rp = _round_up(R, tr)
    z_flat = z_e.reshape(R, Din).astype(jnp.float32)
    if Rp != R:
        z_flat = jnp.pad(z_flat, ((0, Rp - R), (0, 0)))

    # Hoist constant transposes / reductions out of the kernel (done once in XLA).
    wdt = wd.T.astype(jnp.float32)                                  # [Din, De]
    wut = wu.T.astype(jnp.float32)                                  # [De, Din]
    embf = emb.astype(jnp.float32)                                  # [N, De]
    e_sq = jnp.sum(embf * embf, axis=-1, keepdims=True).T           # [1, N]

    # Pad the codebook axis to a multiple of 128 so dist / one-hot tiles are
    # lane-dense; padded entries get e_sq = +inf so they never win the argmin.
    Np = _round_up(max(N, 128), 128)
    if Np != N:
        embf = jnp.pad(embf, ((0, Np - N), (0, 0)))
        e_sq = jnp.pad(e_sq, ((0, 0), (0, Np - N)),
                       constant_values=jnp.float32(jnp.inf))
    embt = embf.T                                                   # [De, Np]

    out_shapes = (
        jax.ShapeDtypeStruct((Rp, Din), jnp.float32),   # z_q (flat)
        jax.ShapeDtypeStruct((Rp, De), jnp.float32),    # z_e_down (flat)
        jax.ShapeDtypeStruct((Rp, 1), jnp.int32),       # code (flat, column)
        jax.ShapeDtypeStruct((Rp, 1), jnp.float32),     # per-row squared error
    )

    grid_spec = pltpu.PrefetchScalarGridSpec(
        num_scalar_prefetch=0,
        grid=(Rp // tr,),
        in_specs=[
            pl.BlockSpec((tr, Din), lambda r: (r, 0)),
            pl.BlockSpec((Din, De), lambda r: (0, 0)),
            pl.BlockSpec((De, Din), lambda r: (0, 0)),
            pl.BlockSpec((Np, De), lambda r: (0, 0)),
            pl.BlockSpec((De, Np), lambda r: (0, 0)),
            pl.BlockSpec((1, Np), lambda r: (0, 0)),
        ],
        out_specs=(
            pl.BlockSpec((tr, Din), lambda r: (r, 0)),
            pl.BlockSpec((tr, De), lambda r: (r, 0)),
            pl.BlockSpec((tr, 1), lambda r: (r, 0)),
            pl.BlockSpec((tr, 1), lambda r: (r, 0)),
        ),
    )

    zq_flat, zed_flat, code_flat, rse_flat = pl.pallas_call(
        _codebook_kernel,
        out_shape=out_shapes,
        grid_spec=grid_spec,
        compiler_params=pltpu.CompilerParams(
            dimension_semantics=("parallel",)),
    )(z_flat, wdt, wut, embf, embt, e_sq)

    z_q = zq_flat[:R].reshape(B, T, Din)
    z_e_down = zed_flat[:R].reshape(B, T, De)
    code = code_flat[:R, 0].reshape(B, T)
    # Per-batch MSE over (T, De), finished from per-row partial sums.
    loss = rse_flat[:R, 0].reshape(B, T).sum(axis=1) / (T * De)
    # TODO(synk): training-mode branches (freeze / straight-through estimator) are
    # autodiff-time behaviors with no forward-only Pallas equivalent; only the
    # inference path is implemented.
    return (z_q, z_e_down, code), (loss, loss)


def _reference_forward(z_e, wd, wu, emb):
    """Pure-JAX reference mirroring the PyTorch forward (inference mode)."""
    z_down = jnp.einsum("btd,ed->bte", z_e, wd)
    zf = z_down.reshape(-1, z_down.shape[-1])
    dist = (jnp.sum(zf**2, axis=1, keepdims=True)
            - 2.0 * zf @ emb.T
            + jnp.sum(emb**2, axis=1, keepdims=True).T)
    code = jnp.argmin(dist, axis=1).reshape(z_e.shape[0], z_e.shape[1])
    z_q_down = emb[code]
    loss = jnp.mean((z_q_down - z_down) ** 2, axis=(1, 2))
    z_q = jnp.einsum("bte,de->btd", z_q_down, wu)
    return (z_q, z_down, code), (loss, loss)


if __name__ == "__main__":
    # Small shapes consistent with the module: input_dim != embedding_dim -> do_proj
    B, T = 2, 8
    INPUT_DIM, EMBED_DIM, NUM_EMB = 64, 32, 128

    key = jax.random.PRNGKey(0)
    k1, k2, k3, k4 = jax.random.split(key, 4)

    # Deterministic parameter init (shapes follow nn.Embedding / nn.Linear(bias=False))
    emb = jax.random.normal(k1, (NUM_EMB, EMBED_DIM), dtype=jnp.float32)
    bound_d = 1.0 / jnp.sqrt(INPUT_DIM)
    wd = jax.random.uniform(k2, (EMBED_DIM, INPUT_DIM), jnp.float32,
                            minval=-bound_d, maxval=bound_d)   # proj_down.weight
    bound_u = 1.0 / jnp.sqrt(EMBED_DIM)
    wu = jax.random.uniform(k3, (INPUT_DIM, EMBED_DIM), jnp.float32,
                            minval=-bound_u, maxval=bound_u)   # proj_up.weight

    z_e = jax.random.normal(k4, (B, T, INPUT_DIM), dtype=jnp.float32)

    (z_q, z_e_down, code), (closs, qloss) = codebook_forward(z_e, wd, wu, emb)
    jax.block_until_ready((z_q, z_e_down, code, closs, qloss))

    # Sanity check against pure-JAX reference
    (rq, rd, rc), (rcl, rql) = _reference_forward(z_e, wd, wu, emb)
    assert jnp.allclose(z_q, rq, atol=1e-4), "z_q mismatch"
    assert jnp.allclose(z_e_down, rd, atol=1e-4), "z_e_down mismatch"
    assert jnp.array_equal(code, rc), "code mismatch"
    assert jnp.allclose(closs, rcl, atol=1e-5), "commitment_loss mismatch"
    assert jnp.allclose(qloss, rql, atol=1e-5), "codebook_loss mismatch"

    print("KERNEL_OK")
</pallas_src>

<mosaic_0001>
module attributes {stable_mosaic.version = 11 : i64} {
  func.func @_codebook_kernel(%arg0: i32, %arg1: memref<16x64xf32, #tpu.memory_space<vmem>>, %arg2: memref<64x32xf32, #tpu.memory_space<vmem>>, %arg3: memref<32x64xf32, #tpu.memory_space<vmem>>, %arg4: memref<128x32xf32, #tpu.memory_space<vmem>>, %arg5: memref<32x128xf32, #tpu.memory_space<vmem>>, %arg6: memref<1x128xf32, #tpu.memory_space<vmem>>, %arg7: memref<16x64xf32, #tpu.memory_space<vmem>>, %arg8: memref<16x32xf32, #tpu.memory_space<vmem>>, %arg9: memref<16x1xi32, #tpu.memory_space<vmem>>, %arg10: memref<16x1xf32, #tpu.memory_space<vmem>>) attributes {dimension_semantics = [#tpu.dimension_semantics<parallel>], iteration_bounds = array<i64: 1>, scalar_prefetch = 0 : i64, scratch_operands = 0 : i64, tpu.core_type = #tpu.core_type<tc>, window_params = [{transform_indices = @transform_0, window_bounds = array<i64: 16, 64>}, {pipeline_mode = #tpu.pipeline_mode<synchronous>, transform_indices = @transform_1, window_bounds = array<i64: 64, 32>}, {pipeline_mode = #tpu.pipeline_mode<synchronous>, transform_indices = @transform_2, window_bounds = array<i64: 32, 64>}, {pipeline_mode = #tpu.pipeline_mode<synchronous>, transform_indices = @transform_3, window_bounds = array<i64: 128, 32>}, {pipeline_mode = #tpu.pipeline_mode<synchronous>, transform_indices = @transform_4, window_bounds = array<i64: 32, 128>}, {pipeline_mode = #tpu.pipeline_mode<synchronous>, transform_indices = @transform_5, window_bounds = array<i64: 1, 128>}, {transform_indices = @transform_6, window_bounds = array<i64: 16, 64>}, {transform_indices = @transform_7, window_bounds = array<i64: 16, 32>}, {transform_indices = @transform_8, window_bounds = array<i64: 16, 1>}, {transform_indices = @transform_9, window_bounds = array<i64: 16, 1>}]} {
    %c0 = arith.constant 0 : index
    %c0_0 = arith.constant 0 : index
    %0 = vector.load %arg1[%c0, %c0_0] : memref<16x64xf32, #tpu.memory_space<vmem>>, vector<16x64xf32>
    %c0_1 = arith.constant 0 : index
    %c0_2 = arith.constant 0 : index
    %1 = vector.load %arg2[%c0_1, %c0_2] : memref<64x32xf32, #tpu.memory_space<vmem>>, vector<64x32xf32>
    %c0_3 = arith.constant 0 : index
    %c0_4 = arith.constant 0 : index
    %2 = vector.load %arg3[%c0_3, %c0_4] : memref<32x64xf32, #tpu.memory_space<vmem>>, vector<32x64xf32>
    %c0_5 = arith.constant 0 : index
    %c0_6 = arith.constant 0 : index
    %3 = vector.load %arg4[%c0_5, %c0_6] : memref<128x32xf32, #tpu.memory_space<vmem>>, vector<128x32xf32>
    %c0_7 = arith.constant 0 : index
    %c0_8 = arith.constant 0 : index
    %4 = vector.load %arg5[%c0_7, %c0_8] : memref<32x128xf32, #tpu.memory_space<vmem>>, vector<32x128xf32>
    %c0_9 = arith.constant 0 : index
    %c0_10 = arith.constant 0 : index
    %5 = vector.load %arg6[%c0_9, %c0_10] : memref<1x128xf32, #tpu.memory_space<vmem>>, vector<1x128xf32>
    %cst = arith.constant dense<0.000000e+00> : vector<16x32xf32>
    %6 = tpu.matmul %0, %1, %cst {dimension_numbers = #tpu.dot_dimension_numbers<[1], [0], [0], [1], [0, 0, 1, 1], [], []>} : vector<16x64xf32>, vector<64x32xf32>, vector<16x32xf32> -> vector<16x32xf32>
    %cst_11 = arith.constant dense<0.000000e+00> : vector<16x128xf32>
    %7 = tpu.matmul %6, %4, %cst_11 {dimension_numbers = #tpu.dot_dimension_numbers<[1], [0], [0], [1], [0, 0, 1, 1], [], []>} : vector<16x32xf32>, vector<32x128xf32>, vector<16x128xf32> -> vector<16x128xf32>
    %cst_12 = arith.constant 2.000000e+00 : f32
    %8 = vector.broadcast %cst_12 : f32 to vector<16x128xf32>
    %9 = arith.mulf %8, %7 : vector<16x128xf32>
    %10 = vector.broadcast %5 : vector<1x128xf32> to vector<16x128xf32>
    %11 = arith.subf %10, %9 : vector<16x128xf32>
    %cst_13 = arith.constant dense<0x7F800000> : vector<16xf32>
    %12 = vector.multi_reduction <minimumf>, %11, %cst_13 [1] : vector<16x128xf32> to vector<16xf32>
    %13 = vector.shape_cast %12 : vector<16xf32> to vector<16x1xf32>
    %14 = tpu.iota {dimensions = array<i32: 1>} : vector<16x128xi32>
    %15 = vector.broadcast %13 : vector<16x1xf32> to vector<16x128xf32>
    %16 = arith.cmpf ole, %11, %15 : vector<16x128xf32>
    %c128_i32 = arith.constant 128 : i32
    %17 = vector.broadcast %c128_i32 : i32 to vector<16x128xi32>
    %18 = arith.select %16, %14, %17 : vector<16x128xi1>, vector<16x128xi32>
    %cst_14 = arith.constant dense<2147483647> : vector<16xi32>
    %19 = vector.multi_reduction <minsi>, %18, %cst_14 [1] : vector<16x128xi32> to vector<16xi32>
    %20 = vector.shape_cast %19 : vector<16xi32> to vector<16x1xi32>
    %21 = vector.broadcast %20 : vector<16x1xi32> to vector<16x128xi32>
    %22 = arith.cmpi eq, %14, %21 : vector<16x128xi32>
    %23 = arith.extui %22 : vector<16x128xi1> to vector<16x128xi32>
    %24 = arith.sitofp %23 : vector<16x128xi32> to vector<16x128xf32>
    %cst_15 = arith.constant dense<0.000000e+00> : vector<16x32xf32>
    %25 = tpu.matmul %24, %3, %cst_15 {dimension_numbers = #tpu.dot_dimension_numbers<[1], [0], [0], [1], [0, 0, 1, 1], [], []>} : vector<16x128xf32>, vector<128x32xf32>, vector<16x32xf32> -> vector<16x32xf32>
    %26 = arith.subf %25, %6 : vector<16x32xf32>
    %27 = arith.mulf %26, %26 : vector<16x32xf32>
    %cst_16 = arith.constant dense<0.000000e+00> : vector<16xf32>
    %28 = vector.multi_reduction <add>, %27, %cst_16 [1] : vector<16x32xf32> to vector<16xf32>
    %29 = vector.shape_cast %28 : vector<16xf32> to vector<16x1xf32>
    %cst_17 = arith.constant dense<0.000000e+00> : vector<16x64xf32>
    %30 = tpu.matmul %25, %2, %cst_17 {dimension_numbers = #tpu.dot_dimension_numbers<[1], [0], [0], [1], [0, 0, 1, 1], [], []>} : vector<16x32xf32>, vector<32x64xf32>, vector<16x64xf32> -> vector<16x64xf32>
    %c0_18 = arith.constant 0 : index
    %c0_19 = arith.constant 0 : index
    %31 = vector.load %arg7[%c0_18, %c0_19] : memref<16x64xf32, #tpu.memory_space<vmem>>, vector<16x64xf32>
    tpu.vector_store %arg7[%c0_18, %c0_19], %30 {strides = array<i32>} : memref<16x64xf32, #tpu.memory_space<vmem>>, vector<16x64xf32>,
    %c0_20 = arith.constant 0 : index
    %c0_21 = arith.constant 0 : index
    %32 = vector.load %arg8[%c0_20, %c0_21] : memref<16x32xf32, #tpu.memory_space<vmem>>, vector<16x32xf32>
    tpu.vector_store %arg8[%c0_20, %c0_21], %6 {strides = array<i32>} : memref<16x32xf32, #tpu.memory_space<vmem>>, vector<16x32xf32>,
    %c0_22 = arith.constant 0 : index
    %c0_23 = arith.constant 0 : index
    %33 = vector.load %arg9[%c0_22, %c0_23] : memref<16x1xi32, #tpu.memory_space<vmem>>, vector<16x1xi32>
    tpu.vector_store %arg9[%c0_22, %c0_23], %20 {strides = array<i32>} : memref<16x1xi32, #tpu.memory_space<vmem>>, vector<16x1xi32>,
    %c0_24 = arith.constant 0 : index
    %c0_25 = arith.constant 0 : index
    %34 = vector.load %arg10[%c0_24, %c0_25] : memref<16x1xf32, #tpu.memory_space<vmem>>, vector<16x1xf32>
    tpu.vector_store %arg10[%c0_24, %c0_25], %29 {strides = array<i32>} : memref<16x1xf32, #tpu.memory_space<vmem>>, vector<16x1xf32>,
    return
  }
  func.func @transform_0(%arg0: i32) -> (i32, i32) {
    %c0_i32 = arith.constant 0 : i32
    %c0_i32_0 = arith.constant 0 : i32
    return %arg0, %c0_i32 : i32, i32
  }
  func.func @transform_1(%arg0: i32) -> (i32, i32) {
    %c0_i32 = arith.constant 0 : i32
    %c0_i32_0 = arith.constant 0 : i32
    %c0_i32_1 = arith.constant 0 : i32
    return %c0_i32, %c0_i32_0 : i32, i32
  }
  func.func @transform_2(%arg0: i32) -> (i32, i32) {
    %c0_i32 = arith.constant 0 : i32
    %c0_i32_0 = arith.constant 0 : i32
    %c0_i32_1 = arith.constant 0 : i32
    return %c0_i32, %c0_i32_0 : i32, i32
  }
  func.func @transform_3(%arg0: i32) -> (i32, i32) {
    %c0_i32 = arith.constant 0 : i32
    %c0_i32_0 = arith.constant 0 : i32
    %c0_i32_1 = arith.constant 0 : i32
    return %c0_i32, %c0_i32_0 : i32, i32
  }
  func.func @transform_4(%arg0: i32) -> (i32, i32) {
    %c0_i32 = arith.constant 0 : i32
    %c0_i32_0 = arith.constant 0 : i32
    %c0_i32_1 = arith.constant 0 : i32
    return %c0_i32, %c0_i32_0 : i32, i32
  }
  func.func @transform_5(%arg0: i32) -> (i32, i32) {
    %c0_i32 = arith.constant 0 : i32
    %c0_i32_0 = arith.constant 0 : i32
    %c0_i32_1 = arith.constant 0 : i32
    return %c0_i32, %c0_i32_0 : i32, i32
  }
  func.func @transform_6(%arg0: i32) -> (i32, i32) {
    %c0_i32 = arith.constant 0 : i32
    %c0_i32_0 = arith.constant 0 : i32
    return %arg0, %c0_i32 : i32, i32
  }
  func.func @transform_7(%arg0: i32) -> (i32, i32) {
    %c0_i32 = arith.constant 0 : i32
    %c0_i32_0 = arith.constant 0 : i32
    return %arg0, %c0_i32 : i32, i32
  }
  func.func @transform_8(%arg0: i32) -> (i32, i32) {
    %c0_i32 = arith.constant 0 : i32
    %c0_i32_0 = arith.constant 0 : i32
    return %arg0, %c0_i32 : i32, i32
  }
  func.func @transform_9(%arg0: i32) -> (i32, i32) {
    %c0_i32 = arith.constant 0 : i32
    %c0_i32_0 = arith.constant 0 : i32
    return %arg0, %c0_i32 : i32, i32
  }
}

</mosaic_0001>

<bundles_post_ra>
// kernel: squeeze.2
= control target key start
LH: loop header
LB: loop body
LE: loop exit
PB: predicated region body
PF: predicated region fallthrough
CT: control target
= control target key end

     0   :  { %s80_s0 = inlined_call_operand.vmem [shape: s32[16], index: 0, kind: input, shape index: {}]   ;;  %s81_s1 = inlined_call_operand.hbm [shape: s32[2,8], index: 1, kind: output, shape index: {}]  }
   0x1   :  { %v5_v0 = vld [vmem:[%s80_s0] sm:$0x1] }
   0x2   :  { %2 = vsyncpa [#allocation1], 0  ;;  %6 = vst [vmem:[#allocation3] sm:$0x1] %v5_v0  ;;  %vm8_vm0 = vcmask 64512   ;;  %s62_s0 = smov 120  }
   0x3   :  { %s63_s8 = smov [#allocation0]   ;;  %s27_s1 = sshll.u32 %s81_s1, 4  ;;  %s28_s1 = int_to_ptr.hbm [resolvable:$true] %s27_s1 }
   0x4   :  { %s25_s9 = sshll.u32 %s63_s8, 4  ;;  %s26_s9 = int_to_ptr.vmem [resolvable:$true] %s25_s9 }
   0x9   :  { %v10_v1 = vld [vmem:[#allocation3] sm:$0x1]  }
   0xa   :  { %v7_v2 = vld [vmem:[#allocation3] sm:$0x1]   ;;  %11 = vrot.lane.b32.xlu0 %v10_v1, %s62_s0 }
   0xb   :  { %9 = vst.msk [vmem:[#allocation2] sm:$0x1] %vm8_vm0, %v7_v2  }
  0x7c   :  { %v12_v3 = vpop.permute.xlu0 %11  }
  0x7d   :  { %15 = vst.msk [vmem:[#allocation2 + $0x1] sm:$0x1] %vm8_vm0, %v12_v3  }
  0x84   :  { %v18_v4 = vld [vmem:[#allocation2] sm:$0x3] }
  0x85   :  { %21 = vst [vmem:[#allocation0] sm:$0x3] %v18_v4 }
  0x86   :  { %30 = dma.vmem_to_hbm [thread:$0]  %s26_s9, 32, %s28_s1, [#allocation1]  }
  0x87   :  { %60 = dma.done.wait [#allocation1], 32  }
  0x88   :  { %61 = vsyncadd [#allocation1], 4294967264 }
  0x89   :  { %33 = vsyncpa [#allocation1], 1 }

// kernel: squeeze.3
= control target key start
LH: loop header
LB: loop body
LE: loop exit
PB: predicated region body
PF: predicated region fallthrough
CT: control target
= control target key end

     0   :  { %vm7_vm0 = vcmask 64512   ;;  %s39_s0 = inlined_call_operand.vmem [shape: f32[16], index: 0, kind: input, shape index: {}]   ;;  %s40_s1 = inlined_call_operand.vmem [shape: f32[2,8], index: 1, kind: output, shape index: {}]  }
   0x1   :  { %v4_v0 = vld [vmem:[%s39_s0] sm:$0x1]  ;;  %s22_s0 = smov 120  }
   0x2   :  { %5 = vst [vmem:[#allocation1] sm:$0x1] %v4_v0 }
   0x9   :  { %v9_v1 = vld [vmem:[#allocation1] sm:$0x1]  }
   0xa   :  { %v6_v2 = vld [vmem:[#allocation1] sm:$0x1]   ;;  %10 = vrot.lane.b32.xlu0 %v9_v1, %s22_s0 }
   0xb   :  { %8 = vst.msk [vmem:[#allocation0] sm:$0x1] %vm7_vm0, %v6_v2  }
  0x7c   :  { %v11_v3 = vpop.permute.xlu0 %10  }
  0x7d   :  { %14 = vst.msk [vmem:[#allocation0 + $0x1] sm:$0x1] %vm7_vm0, %v11_v3  }
  0x84   :  { %v17_v4 = vld [vmem:[#allocation0] sm:$0x3] }
  0x85   :  { %20 = vst [vmem:[%s40_s1] sm:$0x3] %v17_v4 }

// kernel: codebook_forward.1
= control target key start
LH: loop header
LB: loop body
LE: loop exit
PB: predicated region body
PF: predicated region fallthrough
CT: control target
= control target key end

     0   :  { %15 = vsyncpa [#allocation3], 0  ;;  %s568_s0 = inlined_call_operand.vmem [shape: f32[16,64], index: 0, kind: input, shape index: {}]   ;;  %s569_s1 = inlined_call_operand.vmem [shape: f32[64,32], index: 1, kind: input, shape index: {}]   ;;  %s570_s2 = inlined_call_operand.vmem [shape: f32[32,64], index: 2, kind: input, shape index: {}]   ;;  %s571_s3 = inlined_call_operand.vmem [shape: f32[128,32], index: 3, kind: input, shape index: {}]   ;;  %s572_s4 = inlined_call_operand.vmem [shape: f32[32,128], index: 4, kind: input, shape index: {}]   ;;  %s573_s5 = inlined_call_operand.vmem [shape: f32[1,128], index: 5, kind: input, shape index: {}]   ;;  %s574_s6 = inlined_call_operand.hbm [shape: f32[16,64], index: 6, kind: output, shape index: {0}]   ;;  %s575_s7 = inlined_call_operand.hbm [shape: f32[16,32], index: 7, kind: output, shape index: {1}]   ;;  %s576_s8 = inlined_call_operand.vmem [shape: s32[16,1], index: 8, kind: output, shape index: {2}]   ;;  %s577_s9 = inlined_call_operand.vmem [shape: f32[16,1], index: 9, kind: output, shape index: {3}]  }
   0x1   :  { %v38_v0 = vld [vmem:[%s569_s1 + $0x38] sm:$0xff]  ;;  %v37_v1 = vld [vmem:[%s569_s1 + $0x30] sm:$0xff]  ;;  %v36_v2 = vld [vmem:[%s569_s1 + $0x28] sm:$0xff] }
   0x2   :  { %79 = vmatpush.msra.mxu0 %v38_v0  ;;  %v62_v3 = vld [vmem:[%s572_s4 + $0x18] sm:$0xff]  ;;  %v61_v4 = vld [vmem:[%s572_s4 + $0x10] sm:$0xff]  ;;  %v35_v5 = vld [vmem:[%s569_s1 + $0x20] sm:$0xff] }
   0x3   :  { %113 = vmatpush.msra.mxu1 %v62_v3 }
   0x4   :  { %80 = vmatpush.msra.mxu0 %v37_v1 }
   0x5   :  { %16 = vsyncpa [#allocation5], 0  ;;  %v60_v6 = vld [vmem:[%s572_s4 + $0x8] sm:$0xff]  ;;  %v34_v7 = vld [vmem:[%s569_s1 + $0x18] sm:$0xff]  ;;  %114 = vmatpush.msra.mxu1 %v61_v4  ;;  %vm64_vm0 = vcmask 523264   ;;  %vm94_vm1 = vcmask 261120   ;;  %v135_v23 = vlaneseq }
   0x6   :  { %81 = vmatpush.msra.mxu0 %v36_v2  ;;  %v33_v8 = vld [vmem:[%s569_s1 + $0x10] sm:$0xff]  ;;  %v32_v9 = vld [vmem:[%s569_s1 + $0x8] sm:$0xff]  ;;  %v31_v10 = vld [vmem:[%s569_s1] sm:$0xff]  ;;  %vm241_vm6 = vcmask 7168   ;;  %v358_v2 = vmov 1.0   ;;  %s265_s13 = sshll.u32 %s575_s7, 4  ;;  %s266_s13 = int_to_ptr.hbm [resolvable:$true] %s265_s13 }
   0x7   :  { %115 = vmatpush.msra.mxu1 %v60_v6  ;;  %v29_v11 = vld [vmem:[%s568_s0] sm:$0xff]  ;;  %v30_v12 = vld [vmem:[%s568_s0 + $0x8] sm:$0xff]  ;;  %v472_v24 = vand.u32 127, %v135_v23  ;;  %v58_v33 = vld [vmem:[%s571_s3 + $0x78] sm:$0xff]  ;;  %s360_s14 = smov 128   ;;  %s361_s15 = smov 8  }
   0x8   :  { %82 = vmatpush.msra.mxu0 %v35_v5  ;;  %v59_v13 = vld [vmem:[%s572_s4] sm:$0xff]  ;;  %v57_v34 = vld [vmem:[%s571_s3 + $0x70] sm:$0xff]  ;;  %175 = vmatpush.msra.mxu2 %v58_v33  ;;  %v56_v35 = vld [vmem:[%s571_s3 + $0x68] sm:$0xff]  ;;  %s362_s7 = smov [#allocation2]   ;;  %s252_s19 = sshll.u32 %s574_s6, 4  ;;  %s253_s19 = int_to_ptr.hbm [resolvable:$true] %s252_s19 }
   0x9   :  { %116 = vmatpush.msra.mxu1 %v59_v13  ;;  %v305_v16 = vld [vmem:[%s573_s5] ss:$0 sm:$0xff]  ;;  %v54_v37 = vld [vmem:[%s571_s3 + $0x58] sm:$0xff]  ;;  %v53_v38 = vld [vmem:[%s571_s3 + $0x50] sm:$0xff]  ;;  %s250_s16 = sshll.u32 %s362_s7, 4  ;;  %s251_s16 = int_to_ptr.vmem [resolvable:$true] %s250_s16 }
   0xa   :  { %83 = vmatpush.msra.mxu0 %v34_v7  ;;  %176 = vmatpush.msra.mxu2 %v57_v34  ;;  %v55_v36 = vld [vmem:[%s571_s3 + $0x60] sm:$0xff]  ;;  %v52_v39 = vld [vmem:[%s571_s3 + $0x48] sm:$0xff]  ;;  %v50_v41 = vld [vmem:[%s571_s3 + $0x38] sm:$0xff] }
   0xb   :  { %v51_v40 = vld [vmem:[%s571_s3 + $0x40] sm:$0xff]  ;;  %v49_v42 = vld [vmem:[%s571_s3 + $0x30] sm:$0xff]  ;;  %v48_v44 = vld [vmem:[%s571_s3 + $0x28] sm:$0xff] }
   0xc   :  { %84 = vmatpush.msra.mxu0 %v33_v8  ;;  %177 = vmatpush.msra.mxu2 %v56_v35  ;;  %v47_v45 = vld [vmem:[%s571_s3 + $0x20] sm:$0xff]  ;;  %v46_v48 = vld [vmem:[%s571_s3 + $0x18] sm:$0xff]  ;;  %v45_v54 = vld [vmem:[%s571_s3 + $0x10] sm:$0xff] }
   0xd   :  { %v44_v55 = vld [vmem:[%s571_s3 + $0x8] sm:$0xff]  ;;  %v43_v56 = vld [vmem:[%s571_s3] sm:$0xff]  ;;  %v42_v57 = vld [vmem:[%s570_s2 + $0x18] sm:$0xff] }
   0xe   :  { %85 = vmatpush.msra.mxu0 %v32_v9  ;;  %178 = vmatpush.msra.mxu2 %v55_v36  ;;  %v41_v58 = vld [vmem:[%s570_s2 + $0x10] sm:$0xff]  ;;  %v40_v59 = vld [vmem:[%s570_s2 + $0x8] sm:$0xff]  ;;  %v39_v7 = vld [vmem:[%s570_s2] sm:$0xff]  ;;  %s359_s2 = smov [#allocation4]  }
   0xf   :  { %226 = vmatpush.msra.mxu3 %v42_v57 }
  0x10   :  { %86 = vmatpush.msra.mxu0 %v31_v10  ;;  %179 = vmatpush.msra.mxu2 %v54_v37 }
  0x11   :  { %290 = vmatmul.msk.f32.vlgmr.msra.gmra.mxu0 %vm64_vm0, %v29_v11  ;;  %227 = vmatpush.msra.mxu3 %v41_v58 }
  0x12   :  { %180 = vmatpush.msra.mxu2 %v53_v38 }
  0x13   :  { %228 = vmatpush.msra.mxu3 %v40_v59 }
  0x14   :  { %181 = vmatpush.msra.mxu2 %v52_v39 }
  0x15   :  { %229 = vmatpush.msra.mxu3 %v39_v7 }
  0x16   :  { %182 = vmatpush.msra.mxu2 %v51_v40 }
  0x18   :  { %183 = vmatpush.msra.mxu2 %v50_v41 }
  0x19   :  { %291 = vmatmul.msk.f32.gmra.mxu0 %vm64_vm0, %v30_v12 }
  0x1a   :  { %184 = vmatpush.msra.mxu2 %v49_v42 }
  0x1c   :  { %185 = vmatpush.msra.mxu2 %v48_v44 }
  0x1e   :  { %186 = vmatpush.msra.mxu2 %v47_v45 }
  0x20   :  { %187 = vmatpush.msra.mxu2 %v46_v48 }
  0x22   :  { %188 = vmatpush.msra.mxu2 %v45_v54 }
  0x24   :  { %189 = vmatpush.msra.mxu2 %v44_v55 }
  0x26   :  { %190 = vmatpush.msra.mxu2 %v43_v56 }
  0x8e   :  { %v457_v14 = vpop.f32.mrf.mxu0 }
  0x8f   :  { %239 = vst.msk [vmem:[#allocation4] sm:$0xff] %vm94_vm1, %v457_v14  ;;  %292 = vmatmul.msk.f32.vlgmr.msra.gmra.mxu1 %vm94_vm1, %v457_v14 }
  0x96   :  { %v463_v15 = vpop.f32.mrf.mxu0 }
  0x97   :  { %240 = vst.msk [vmem:[#allocation4 + $0x8] sm:$0xff] %vm94_vm1, %v463_v15  ;;  %293 = vmatmul.msk.f32.gmra.mxu1 %vm94_vm1, %v463_v15 }
 0x10c   :  { %v118_v17 = vpop.f32.mrf.mxu1 }
 0x10d   :  { %v124_v18 = vmul.f32 2.0, %v118_v17 }
 0x10f   :  { %v129_v19 = vsub.f32 %v305_v16, %v124_v18 }
 0x111   :  { %131 = vmin.xlane.f32.xlu0 %v129_v19 }
 0x114   :  { %v121_v20 = vpop.f32.mrf.mxu1 }
 0x115   :  { %v125_v21 = vmul.f32 2.0, %v121_v20 }
 0x117   :  { %v130_v22 = vsub.f32 %v305_v16, %v125_v21 }
 0x119   :  { %133 = vmin.xlane.f32.xlu0 %v130_v22 }
 0x184   :  { %v132_v25 = vpop.xlane.xlu0 %131 }
 0x185   :  { %vm137_vm2 = vcmp.le.f32.partialorder %v129_v19, %v132_v25 }
 0x186   :  { %v139_v26 = vsel %vm137_vm2, %v472_v24, 128 }
 0x187   :  { %v142_v27 = vshra.s32 %v139_v26, 16  ;;  %v141_v43 = vand.u32 65535, %v139_v26 }
 0x189   :  { %v144_v28 = vcvt.s32.f32 %v142_v27  ;;  %v143_v47 = vcvt.s32.f32 %v141_v43 }
 0x18b   :  { %145 = vmin.xlane.f32.xlu1 %v144_v28 }
 0x18c   :  { %v134_v29 = vpop.xlane.xlu0 %133 }
 0x18d   :  { %vm138_vm3 = vcmp.le.f32.partialorder %v130_v22, %v134_v29 }
 0x18e   :  { %v140_v30 = vsel %vm138_vm3, %v472_v24, 128 }
 0x18f   :  { %v156_v31 = vshra.s32 %v140_v30, 16  ;;  %v155_v50 = vand.u32 65535, %v140_v30 }
 0x191   :  { %v158_v32 = vcvt.s32.f32 %v156_v31  ;;  %v157_v52 = vcvt.s32.f32 %v155_v50 }
 0x193   :  { %159 = vmin.xlane.f32.xlu1 %v158_v32 }
 0x1fe   :  { %v146_v46 = vpop.xlane.xlu1 %145 }
 0x1ff   :  { %vm147_vm4 = vcmp.eq.f32.partialorder %v144_v28, %v146_v46  ;;  %v152_v60 = vcvt.f32.s32 %v146_v46 }
 0x200   :  { %v148_v49 = vsel %vm147_vm4, %v143_v47, inf }
 0x201   :  { %149 = vmin.xlane.f32.xlu2 %v148_v49  ;;  %v153_v62 = vshll.u32 %v152_v60, 16 }
 0x206   :  { %v160_v51 = vpop.xlane.xlu1 %159 }
 0x207   :  { %vm161_vm5 = vcmp.eq.f32.partialorder %v158_v32, %v160_v51  ;;  %v166_v1 = vcvt.f32.s32 %v160_v51 }
 0x208   :  { %v162_v53 = vsel %vm161_vm5, %v157_v52, inf }
 0x209   :  { %163 = vmin.xlane.f32.xlu2 %v162_v53  ;;  %v167_v4 = vshll.u32 %v166_v1, 16 }
 0x274   :  { %v150_v61 = vpop.xlane.xlu2 %149 }
 0x275   :  { %v151_v63 = vcvt.f32.s32 %v150_v61 }
 0x277   :  { %v154_v0 = vadd.s32 %v153_v62, %v151_v63 }
 0x279   :  { %242 = vst.msk [vmem:[%s576_s8] sm:$0xff] %vm241_vm6, %v154_v0  ;;  %vm169_vm7 = vcmp.eq.s32.totalorder %v472_v24, %v154_v0 }
 0x27a   :  { %296 = vmatmul.msk.f32.vlgmr.msra.gmra.mxu2 %vm169_vm7, %v358_v2 }
 0x27c   :  { %v164_v3 = vpop.xlane.xlu2 %163 }
 0x27d   :  { %v165_v5 = vcvt.f32.s32 %v164_v3 }
 0x27f   :  { %v168_v6 = vadd.s32 %v167_v4, %v165_v5 }
 0x281   :  { %243 = vst.msk [vmem:[%s576_s8 + $0x8] sm:$0xff] %vm241_vm6, %v168_v6  ;;  %vm170_vm8 = vcmp.eq.s32.totalorder %v472_v24, %v168_v6  ;;  %s263_s8 = sshll.u32 %s359_s2, 4  ;;  %s264_s8 = int_to_ptr.vmem [resolvable:$true] %s263_s8 }
 0x282   :  { %297 = vmatmul.msk.f32.gmra.mxu2 %vm170_vm8, %v358_v2  ;;  %271 = dma.vmem_to_hbm [thread:$0]  %s264_s8, 256, %s266_s13, [#allocation5], %s360_s14, %s360_s14, %s361_s15  }
 0x2fd   :  { %v192_v8 = vpop.f32.mrf.mxu2 }
 0x2fe   :  { %v198_v9 = vsub.f32 %v192_v8, %v457_v14  ;;  %298 = vmatmul.msk.f32.vlgmr.msra.gmra.mxu3 %vm94_vm1, %v192_v8 }
 0x300   :  { %v200_v10 = vmul.f32 %v198_v9, %v198_v9 }
 0x302   :  { %v202_v11 = vsel %vm94_vm1, %v200_v10, 0.0 }
 0x303   :  { %203 = vadd.xlane.f32.xlu0 %v202_v11 }
 0x305   :  { %v195_v12 = vpop.f32.mrf.mxu2 }
 0x306   :  { %v199_v13 = vsub.f32 %v195_v12, %v463_v15  ;;  %299 = vmatmul.msk.f32.gmra.mxu3 %vm94_vm1, %v195_v12 }
 0x308   :  { %v201_v16 = vmul.f32 %v199_v13, %v199_v13 }
 0x30a   :  { %v205_v17 = vsel %vm94_vm1, %v201_v16, 0.0 }
 0x30b   :  { %206 = vadd.xlane.f32.xlu1 %v205_v17 }
 0x376   :  { %v204_v14 = vpop.xlane.xlu0 %203 }
 0x377   :  { %244 = vst.msk [vmem:[%s577_s9] sm:$0xff] %vm241_vm6, %v204_v14 }
 0x37e   :  { %v207_v15 = vpop.xlane.xlu1 %206 }
 0x37f   :  { %245 = vst.msk [vmem:[%s577_s9 + $0x8] sm:$0xff] %vm241_vm6, %v207_v15 }
 0x381   :  { %v231_v18 = vpop.f32.mrf.mxu3 }
 0x382   :  { %237 = vst.msk [vmem:[#allocation2] sm:$0xff] %vm64_vm0, %v231_v18 }
 0x389   :  { %v234_v19 = vpop.f32.mrf.mxu3 }
 0x38a   :  { %238 = vst.msk [vmem:[#allocation2 + $0x8] sm:$0xff] %vm64_vm0, %v234_v19 }
 0x38b   :  { %258 = dma.vmem_to_hbm [thread:$0]  %s251_s16, 256, %s253_s19, [#allocation3], %s360_s14, %s360_s14, %s361_s15  }
 0x38c   :  { %354 = dma.done.wait [#allocation3], 256  }
 0x38d   :  { %355 = vsyncadd [#allocation3], 4294967040 }
 0x38e   :  { %356 = dma.done.wait [#allocation5], 256  }
 0x38f   :  { %357 = vsyncadd [#allocation5], 4294967040 }
 0x390   :  { %288 = vsyncpa [#allocation3], 1 }
 0x391   :  { %289 = vsyncpa [#allocation5], 1 }

</bundles_post_ra>
